<compile_context>
chip_gen: v7x
topology: tpu7x:2x2x1
jax: 0.10.0
libtpu: 0.0.40
codegen_flags: <defaults>
</compile_context>

<pallas_src>
import functools

import numpy as np
import jax
import jax.numpy as jnp
from jax.experimental import pallas as pl
from jax.experimental.pallas import tpu as pltpu


# ----------------------------------------------------------------------------- kernel
def _gat_kernel(xt_ref, xf_ref, wcat_ref, wlin_ref, ws_ref, wt_ref, eb_ref, bias_ref,
                out_ref, *, heads, f_out, slope):
    hf = heads * f_out

    # fused node transform for this tile of target rows: [tm, 2*H*F] = [ lin | residual ]
    gres = jnp.dot(xt_ref[...], wcat_ref[...], preferred_element_type=jnp.float32)
    g_t = gres[:, :hf]                                   # [tm, H*F]
    base = gres[:, hf:] + bias_ref[...]                  # residual + bias   [tm, H*F]

    # source-side transform for all nodes (stateless recompute -> safe under "parallel")
    g_s = jnp.dot(xf_ref[...], wlin_ref[...], preferred_element_type=jnp.float32)   # [N, H*F]

    # attention coefficients for all heads at once (block-diagonal weight layouts)
    a_t = jnp.dot(g_t, wt_ref[...], preferred_element_type=jnp.float32)             # [tm, H]
    a_s = jnp.einsum('hd,nd->hn', ws_ref[...], g_s,
                     preferred_element_type=jnp.float32)                             # [H, N]

    outs = []
    for h in range(heads):                               # small static unroll (H == 2)
        # eb already holds per-edge edge-feature score + attention biases, and -1e30
        # where no edge exists (additive mask; self-loops guarantee >=1 valid per row).
        e = a_t[:, h:h + 1] + a_s[h:h + 1, :] + eb_ref[h]                            # [tm, N]
        e = jnp.where(e >= 0, e, slope * e)              # leaky_relu
        m = jnp.max(e, axis=1, keepdims=True)
        p = jnp.exp(e - m)                               # masked entries underflow to 0
        inv = pl.reciprocal(jnp.sum(p, axis=1, keepdims=True) + 1e-16, approx=True)
        attn = p * inv
        outs.append(jnp.dot(attn, g_s[:, h * f_out:(h + 1) * f_out],
                            preferred_element_type=jnp.float32))

    # single lane-dense store of the full [tm, H*F] tile
    out_ref[...] = (jnp.concatenate(outs, axis=1) + base).astype(out_ref.dtype)


# ----------------------------------------------------------------------------- glue
def init_params(key, in_features, out_features, edge_in_features, heads):
    hf = heads * out_features
    ks = jax.random.split(key, 10)
    s = 0.1
    return {
        'lin_w':      s * jax.random.normal(ks[0], (in_features, hf), jnp.float32),
        'res_w':      s * jax.random.normal(ks[1], (in_features, hf), jnp.float32),
        'lin_edge_w': s * jax.random.normal(ks[2], (edge_in_features, hf), jnp.float32),
        'attn_s_w':   s * jax.random.normal(ks[3], (1, out_features), jnp.float32),
        'attn_s_b':   s * jax.random.normal(ks[4], (), jnp.float32),
        'attn_t_w':   s * jax.random.normal(ks[5], (1, out_features), jnp.float32),
        'attn_t_b':   s * jax.random.normal(ks[6], (), jnp.float32),
        'attn_e_w':   s * jax.random.normal(ks[7], (1, out_features), jnp.float32),
        'attn_e_b':   s * jax.random.normal(ks[8], (), jnp.float32),
        'bias':       s * jax.random.normal(ks[9], (hf,), jnp.float32),
    }


def preprocess_graph(edge_index, edge_attr, num_nodes):
    """PyG semantics: remove_self_loops + add_self_loops(fill_value='mean')."""
    ei = np.asarray(edge_index)
    ea = np.asarray(edge_attr, dtype=np.float32)
    n, e_in = num_nodes, ea.shape[1]
    keep = ei[0] != ei[1]
    ei, ea = ei[:, keep], ea[keep]
    sums = np.zeros((n, e_in), np.float32)
    counts = np.zeros((n,), np.float32)
    np.add.at(sums, ei[1], ea)              # scatter-mean over incoming edges (edge_index[1])
    np.add.at(counts, ei[1], 1.0)
    loop_attr = sums / np.maximum(counts, 1.0)[:, None]
    loops = np.stack([np.arange(n), np.arange(n)])
    ei = np.concatenate([ei, loops], axis=1).astype(np.int32)
    ea = np.concatenate([ea, loop_attr], axis=0)
    return ei, ea


def gat_layer_forward(x, edge_index, edge_attr, params, *, heads, out_features,
                      negative_slope=0.2, tile_m=None):
    x = jnp.asarray(x, jnp.float32)
    n, f_in = x.shape
    h, f = heads, out_features
    hf = h * f

    ei, ea = preprocess_graph(edge_index, edge_attr, n)
    src, dst = ei[0], ei[1]

    # ---- host-side parameter folding / dense additive score map -----------------------
    # per-edge edge-feature attention score (tiny O(E*E_in*H*F) contraction), folded with
    # the sum of the three attention biases and the -1e30 "no edge" additive mask.
    ef = (ea @ np.asarray(params['lin_edge_w'], np.float32)).reshape(-1, h, f)   # [E, H, F]
    a_e = (ef * np.asarray(params['attn_e_w']).reshape(1, 1, f)).sum(-1)         # [E, H]
    b_att = float(params['attn_s_b']) + float(params['attn_t_b']) + float(params['attn_e_b'])
    eb = np.full((h, n, n), -1e30, np.float32)                                   # [H, tgt, src]
    eb[:, dst, src] = (a_e + b_att).T.astype(np.float32)

    # fused node-transform weights: [F_in, 2*H*F] = [ lin | residual ]
    wcat = np.concatenate([np.asarray(params['lin_w'], np.float32),
                           np.asarray(params['res_w'], np.float32)], axis=1)
    wlin = np.asarray(params['lin_w'], np.float32)

    # block-diagonal attention vectors -> one matmul / einsum covers every head
    ws_vec = np.asarray(params['attn_s_w']).reshape(f)
    wt_vec = np.asarray(params['attn_t_w']).reshape(f)
    ws_heads = np.zeros((h, hf), np.float32)       # a_s:  [H, H*F] contracted on last axis
    wt_blk = np.zeros((hf, h), np.float32)         # a_t:  [H*F, H]
    for hh in range(h):
        ws_heads[hh, hh * f:(hh + 1) * f] = ws_vec
        wt_blk[hh * f:(hh + 1) * f, hh] = wt_vec

    bias_out = np.asarray(params['bias'], np.float32).reshape(1, hf)

    # ---- grid / tiling over target-node rows -------------------------------------------
    if tile_m is None:
        tile_m = n
        for cand in (512, 256, 128, 64, 32, 16, 8):
            if cand <= n and n % cand == 0:
                tile_m = cand
                break
    assert n % tile_m == 0 and (tile_m % 8 == 0 or tile_m == n)
    grid = (n // tile_m,)

    # per-step VMEM footprint (double-buffered pipelined tensors + resident weights + work)
    step_bytes = 4 * (2 * (tile_m * f_in + n * f_in + h * tile_m * n + tile_m * hf)
                      + (f_in * 3 * hf + 2 * hf * h + hf)
                      + (2 * tile_m * hf + n * hf + 3 * h * tile_m * n))
    vmem_limit = int(min(48 * 2 ** 20, max(16 * 2 ** 20, 4 * step_bytes)))

    kernel = functools.partial(_gat_kernel, heads=h, f_out=f, slope=negative_slope)

    def full_spec(shape):
        return pl.BlockSpec(shape, lambda i, _s=shape: tuple(0 for _ in _s))

    out = pl.pallas_call(
        kernel,
        out_shape=jax.ShapeDtypeStruct((n, hf), jnp.float32),
        grid_spec=pltpu.PrefetchScalarGridSpec(
            num_scalar_prefetch=0,
            grid=grid,
            in_specs=[
                pl.BlockSpec((tile_m, f_in), lambda i: (i, 0)),     # x  (target-row tile)
                full_spec((n, f_in)),                               # x  (all source rows)
                full_spec((f_in, 2 * hf)),                          # fused [lin | res] weights
                full_spec((f_in, hf)),                              # lin weights (source side)
                full_spec((h, hf)),                                 # attn_s block-diag
                full_spec((hf, h)),                                 # attn_t block-diag
                pl.BlockSpec((h, tile_m, n), lambda i: (0, i, 0)),  # edge-score / mask map
                full_spec((1, hf)),                                 # output bias
            ],
            out_specs=pl.BlockSpec((tile_m, hf), lambda i: (i, 0)),
        ),
        compiler_params=pltpu.CompilerParams(
            dimension_semantics=("parallel",),
            vmem_limit_bytes=vmem_limit),
    )(x, x,
      jnp.asarray(wcat), jnp.asarray(wlin),
      jnp.asarray(ws_heads), jnp.asarray(wt_blk),
      jnp.asarray(eb), jnp.asarray(bias_out))

    # GATLayer defaults: activation=None (identity), return_attn_weights=False, dropout=0.0
    return out, (ei, ea)


# ----------------------------------------------------------------------------- reference
def gat_reference(x, ei, ea, params, *, heads, out_features, negative_slope=0.2):
    n = x.shape[0]
    h, f = heads, out_features
    src = jnp.asarray(ei[0]); dst = jnp.asarray(ei[1])
    ea = jnp.asarray(ea)
    g = x @ params['lin_w']
    g3 = g.reshape(n, h, f)
    res = x @ params['res_w']
    a_s = (g3 * params['attn_s_w'].reshape(1, 1, f)).sum(-1) + params['attn_s_b']
    a_t = (g3 * params['attn_t_w'].reshape(1, 1, f)).sum(-1) + params['attn_t_b']
    ef3 = (ea @ params['lin_edge_w']).reshape(-1, h, f)
    a_e = (ef3 * params['attn_e_w'].reshape(1, 1, f)).sum(-1) + params['attn_e_b']
    alpha = a_s[src] + a_t[dst] + a_e
    alpha = jnp.where(alpha >= 0, alpha, negative_slope * alpha)
    amax = jax.ops.segment_max(alpha, dst, num_segments=n)
    amax = jnp.where(jnp.isfinite(amax), amax, 0.0)
    p = jnp.exp(alpha - amax[dst])
    denom = jax.ops.segment_sum(p, dst, num_segments=n) + 1e-16
    attn = p / denom[dst]
    msg = attn[:, :, None] * g3[src]
    out3 = jax.ops.segment_sum(msg, dst, num_segments=n)
    return out3.reshape(n, h * f) + res + params['bias'].reshape(1, -1)


# ----------------------------------------------------------------------------- main
if __name__ == "__main__":
    N, F_IN, F_OUT, HEADS, E_IN = 16, 8, 8, 2, 4
    key = jax.random.PRNGKey(0)
    k_param, k_x, k_ea = jax.random.split(key, 3)
    params = init_params(k_param, F_IN, F_OUT, E_IN, HEADS)

    x = jax.random.normal(k_x, (N, F_IN), jnp.float32)
    # deterministic bidirectional ring graph (no self loops, no duplicates)
    idx = np.arange(N)
    src = np.concatenate([idx, (idx + 1) % N])
    dst = np.concatenate([(idx + 1) % N, idx])
    edge_index = np.stack([src, dst]).astype(np.int32)                        # [2, E]
    edge_attr = jax.random.normal(k_ea, (edge_index.shape[1], E_IN), jnp.float32)

    out, (ei_proc, ea_proc) = gat_layer_forward(
        x, edge_index, np.asarray(edge_attr), params,
        heads=HEADS, out_features=F_OUT, tile_m=8)       # tile_m=8 -> 2-step grid
    out = jax.block_until_ready(out)

    ref = jax.block_until_ready(
        gat_reference(x, ei_proc, ea_proc, params, heads=HEADS, out_features=F_OUT))
    assert out.shape == (N, HEADS * F_OUT)
    np.testing.assert_allclose(np.asarray(out), np.asarray(ref), rtol=5e-3, atol=5e-3)
    print("KERNEL_OK")
</pallas_src>

<mosaic_0001>
module attributes {stable_mosaic.version = 11 : i64} {
  func.func @_gat_kernel(%arg0: i32, %arg1: memref<8x8xf32, #tpu.memory_space<vmem>>, %arg2: memref<16x8xf32, #tpu.memory_space<vmem>>, %arg3: memref<8x32xf32, #tpu.memory_space<vmem>>, %arg4: memref<8x16xf32, #tpu.memory_space<vmem>>, %arg5: memref<2x16xf32, #tpu.memory_space<vmem>>, %arg6: memref<16x2xf32, #tpu.memory_space<vmem>>, %arg7: memref<2x8x16xf32, #tpu.memory_space<vmem>>, %arg8: memref<1x16xf32, #tpu.memory_space<vmem>>, %arg9: memref<8x16xf32, #tpu.memory_space<vmem>>) attributes {dimension_semantics = [#tpu.dimension_semantics<parallel>], iteration_bounds = array<i64: 2>, scalar_prefetch = 0 : i64, scratch_operands = 0 : i64, tpu.core_type = #tpu.core_type<tc>, window_params = [{transform_indices = @transform_0, window_bounds = array<i64: 8, 8>}, {pipeline_mode = #tpu.pipeline_mode<synchronous>, transform_indices = @transform_1, window_bounds = array<i64: 16, 8>}, {pipeline_mode = #tpu.pipeline_mode<synchronous>, transform_indices = @transform_2, window_bounds = array<i64: 8, 32>}, {pipeline_mode = #tpu.pipeline_mode<synchronous>, transform_indices = @transform_3, window_bounds = array<i64: 8, 16>}, {pipeline_mode = #tpu.pipeline_mode<synchronous>, transform_indices = @transform_4, window_bounds = array<i64: 2, 16>}, {pipeline_mode = #tpu.pipeline_mode<synchronous>, transform_indices = @transform_5, window_bounds = array<i64: 16, 2>}, {transform_indices = @transform_6, window_bounds = array<i64: 2, 8, 16>}, {pipeline_mode = #tpu.pipeline_mode<synchronous>, transform_indices = @transform_7, window_bounds = array<i64: 1, 16>}, {transform_indices = @transform_8, window_bounds = array<i64: 8, 16>}]} {
    %c0 = arith.constant 0 : index
    %c0_0 = arith.constant 0 : index
    %0 = vector.load %arg1[%c0, %c0_0] : memref<8x8xf32, #tpu.memory_space<vmem>>, vector<8x8xf32>
    %c0_1 = arith.constant 0 : index
    %c0_2 = arith.constant 0 : index
    %1 = vector.load %arg3[%c0_1, %c0_2] : memref<8x32xf32, #tpu.memory_space<vmem>>, vector<8x32xf32>
    %cst = arith.constant dense<0.000000e+00> : vector<8x32xf32>
    %2 = tpu.matmul %0, %1, %cst {dimension_numbers = #tpu.dot_dimension_numbers<[1], [0], [0], [1], [0, 0, 1, 1], [], []>} : vector<8x8xf32>, vector<8x32xf32>, vector<8x32xf32> -> vector<8x32xf32>
    %3 = vector.extract_strided_slice %2 {offsets = [0, 0], sizes = [8, 16], strides = [1, 1]} : vector<8x32xf32> to vector<8x16xf32>
    %4 = vector.extract_strided_slice %2 {offsets = [0, 16], sizes = [8, 16], strides = [1, 1]} : vector<8x32xf32> to vector<8x16xf32>
    %c0_3 = arith.constant 0 : index
    %c0_4 = arith.constant 0 : index
    %5 = vector.load %arg8[%c0_3, %c0_4] : memref<1x16xf32, #tpu.memory_space<vmem>>, vector<1x16xf32>
    %6 = vector.broadcast %5 : vector<1x16xf32> to vector<8x16xf32>
    %7 = arith.addf %4, %6 : vector<8x16xf32>
    %c0_5 = arith.constant 0 : index
    %c0_6 = arith.constant 0 : index
    %8 = vector.load %arg2[%c0_5, %c0_6] : memref<16x8xf32, #tpu.memory_space<vmem>>, vector<16x8xf32>
    %c0_7 = arith.constant 0 : index
    %c0_8 = arith.constant 0 : index
    %9 = vector.load %arg4[%c0_7, %c0_8] : memref<8x16xf32, #tpu.memory_space<vmem>>, vector<8x16xf32>
    %cst_9 = arith.constant dense<0.000000e+00> : vector<16x16xf32>
    %10 = tpu.matmul %8, %9, %cst_9 {dimension_numbers = #tpu.dot_dimension_numbers<[1], [0], [0], [1], [0, 0, 1, 1], [], []>} : vector<16x8xf32>, vector<8x16xf32>, vector<16x16xf32> -> vector<16x16xf32>
    %c0_10 = arith.constant 0 : index
    %c0_11 = arith.constant 0 : index
    %11 = vector.load %arg6[%c0_10, %c0_11] : memref<16x2xf32, #tpu.memory_space<vmem>>, vector<16x2xf32>
    %cst_12 = arith.constant dense<0.000000e+00> : vector<8x2xf32>
    %12 = tpu.matmul %3, %11, %cst_12 {dimension_numbers = #tpu.dot_dimension_numbers<[1], [0], [0], [1], [0, 0, 1, 1], [], []>} : vector<8x16xf32>, vector<16x2xf32>, vector<8x2xf32> -> vector<8x2xf32>
    %c0_13 = arith.constant 0 : index
    %c0_14 = arith.constant 0 : index
    %13 = vector.load %arg5[%c0_13, %c0_14] : memref<2x16xf32, #tpu.memory_space<vmem>>, vector<2x16xf32>
    "tpu.trace_start"() <{level = 10 : i32, message = "hd,nd->hn"}> : () -> ()
    %cst_15 = arith.constant dense<0.000000e+00> : vector<2x16xf32>
    %14 = tpu.matmul %13, %10, %cst_15 {dimension_numbers = #tpu.dot_dimension_numbers<[1], [1], [0], [0], [0, 0, 1, 0], [], []>} : vector<2x16xf32>, vector<16x16xf32>, vector<2x16xf32> -> vector<2x16xf32>
    "tpu.trace_stop"() : () -> ()
    %15 = vector.extract_strided_slice %12 {offsets = [0, 0], sizes = [8, 1], strides = [1, 1]} : vector<8x2xf32> to vector<8x1xf32>
    %16 = vector.extract_strided_slice %14 {offsets = [0, 0], sizes = [1, 16], strides = [1, 1]} : vector<2x16xf32> to vector<1x16xf32>
    %17 = vector.broadcast %15 : vector<8x1xf32> to vector<8x16xf32>
    %18 = vector.broadcast %16 : vector<1x16xf32> to vector<8x16xf32>
    %19 = arith.addf %17, %18 : vector<8x16xf32>
    %c0_16 = arith.constant 0 : index
    %c0_17 = arith.constant 0 : index
    %c0_18 = arith.constant 0 : index
    %20 = vector.load %arg7[%c0_16, %c0_17, %c0_18] : memref<2x8x16xf32, #tpu.memory_space<vmem>>, vector<1x8x16xf32>
    %21 = vector.shape_cast %20 : vector<1x8x16xf32> to vector<8x16xf32>
    %22 = arith.addf %19, %21 : vector<8x16xf32>
    %cst_19 = arith.constant 0.000000e+00 : f32
    %23 = vector.broadcast %cst_19 : f32 to vector<8x16xf32>
    %24 = arith.cmpf oge, %22, %23 : vector<8x16xf32>
    %cst_20 = arith.constant 2.000000e-01 : f32
    %25 = vector.broadcast %cst_20 : f32 to vector<8x16xf32>
    %26 = arith.mulf %25, %22 : vector<8x16xf32>
    %27 = arith.select %24, %22, %26 : vector<8x16xi1>, vector<8x16xf32>
    %cst_21 = arith.constant dense<0xFF800000> : vector<8xf32>
    %28 = vector.multi_reduction <maximumf>, %27, %cst_21 [1] : vector<8x16xf32> to vector<8xf32>
    %29 = vector.shape_cast %28 : vector<8xf32> to vector<8x1xf32>
    %30 = vector.broadcast %29 : vector<8x1xf32> to vector<8x16xf32>
    %31 = arith.subf %27, %30 : vector<8x16xf32>
    %32 = math.exp %31 : vector<8x16xf32>
    %cst_22 = arith.constant dense<0.000000e+00> : vector<8xf32>
    %33 = vector.multi_reduction <add>, %32, %cst_22 [1] : vector<8x16xf32> to vector<8xf32>
    %34 = vector.shape_cast %33 : vector<8xf32> to vector<8x1xf32>
    %cst_23 = arith.constant 1.000000e-16 : f32
    %35 = vector.broadcast %cst_23 : f32 to vector<8x1xf32>
    %36 = arith.addf %34, %35 : vector<8x1xf32>
    %37 = tpu.reciprocal %36 {approx = true} : vector<8x1xf32> -> vector<8x1xf32>
    %38 = vector.broadcast %37 : vector<8x1xf32> to vector<8x16xf32>
    %39 = arith.mulf %32, %38 : vector<8x16xf32>
    %40 = vector.extract_strided_slice %10 {offsets = [0, 0], sizes = [16, 8], strides = [1, 1]} : vector<16x16xf32> to vector<16x8xf32>
    %cst_24 = arith.constant dense<0.000000e+00> : vector<8x8xf32>
    %41 = tpu.matmul %39, %40, %cst_24 {dimension_numbers = #tpu.dot_dimension_numbers<[1], [0], [0], [1], [0, 0, 1, 1], [], []>} : vector<8x16xf32>, vector<16x8xf32>, vector<8x8xf32> -> vector<8x8xf32>
    %42 = vector.extract_strided_slice %12 {offsets = [0, 1], sizes = [8, 1], strides = [1, 1]} : vector<8x2xf32> to vector<8x1xf32>
    %43 = vector.extract_strided_slice %14 {offsets = [1, 0], sizes = [1, 16], strides = [1, 1]} : vector<2x16xf32> to vector<1x16xf32>
    %44 = vector.broadcast %42 : vector<8x1xf32> to vector<8x16xf32>
    %45 = vector.broadcast %43 : vector<1x16xf32> to vector<8x16xf32>
    %46 = arith.addf %44, %45 : vector<8x16xf32>
    %c1 = arith.constant 1 : index
    %c0_25 = arith.constant 0 : index
    %c0_26 = arith.constant 0 : index
    %47 = vector.load %arg7[%c1, %c0_25, %c0_26] : memref<2x8x16xf32, #tpu.memory_space<vmem>>, vector<1x8x16xf32>
    %48 = vector.shape_cast %47 : vector<1x8x16xf32> to vector<8x16xf32>
    %49 = arith.addf %46, %48 : vector<8x16xf32>
    %cst_27 = arith.constant 0.000000e+00 : f32
    %50 = vector.broadcast %cst_27 : f32 to vector<8x16xf32>
    %51 = arith.cmpf oge, %49, %50 : vector<8x16xf32>
    %cst_28 = arith.constant 2.000000e-01 : f32
    %52 = vector.broadcast %cst_28 : f32 to vector<8x16xf32>
    %53 = arith.mulf %52, %49 : vector<8x16xf32>
    %54 = arith.select %51, %49, %53 : vector<8x16xi1>, vector<8x16xf32>
    %cst_29 = arith.constant dense<0xFF800000> : vector<8xf32>
    %55 = vector.multi_reduction <maximumf>, %54, %cst_29 [1] : vector<8x16xf32> to vector<8xf32>
    %56 = vector.shape_cast %55 : vector<8xf32> to vector<8x1xf32>
    %57 = vector.broadcast %56 : vector<8x1xf32> to vector<8x16xf32>
    %58 = arith.subf %54, %57 : vector<8x16xf32>
    %59 = math.exp %58 : vector<8x16xf32>
    %cst_30 = arith.constant dense<0.000000e+00> : vector<8xf32>
    %60 = vector.multi_reduction <add>, %59, %cst_30 [1] : vector<8x16xf32> to vector<8xf32>
    %61 = vector.shape_cast %60 : vector<8xf32> to vector<8x1xf32>
    %cst_31 = arith.constant 1.000000e-16 : f32
    %62 = vector.broadcast %cst_31 : f32 to vector<8x1xf32>
    %63 = arith.addf %61, %62 : vector<8x1xf32>
    %64 = tpu.reciprocal %63 {approx = true} : vector<8x1xf32> -> vector<8x1xf32>
    %65 = vector.broadcast %64 : vector<8x1xf32> to vector<8x16xf32>
    %66 = arith.mulf %59, %65 : vector<8x16xf32>
    %67 = vector.extract_strided_slice %10 {offsets = [0, 8], sizes = [16, 8], strides = [1, 1]} : vector<16x16xf32> to vector<16x8xf32>
    %cst_32 = arith.constant dense<0.000000e+00> : vector<8x8xf32>
    %68 = tpu.matmul %66, %67, %cst_32 {dimension_numbers = #tpu.dot_dimension_numbers<[1], [0], [0], [1], [0, 0, 1, 1], [], []>} : vector<8x16xf32>, vector<16x8xf32>, vector<8x8xf32> -> vector<8x8xf32>
    %69 = tpu.concatenate %41, %68 in 1 : vector<8x8xf32>, vector<8x8xf32> -> vector<8x16xf32>
    %70 = arith.addf %69, %7 : vector<8x16xf32>
    %c0_33 = arith.constant 0 : index
    %c0_34 = arith.constant 0 : index
    %71 = vector.load %arg9[%c0_33, %c0_34] : memref<8x16xf32, #tpu.memory_space<vmem>>, vector<8x16xf32>
    tpu.vector_store %arg9[%c0_33, %c0_34], %70 {strides = array<i32>} : memref<8x16xf32, #tpu.memory_space<vmem>>, vector<8x16xf32>,
    return
  }
  func.func @transform_0(%arg0: i32) -> (i32, i32) {
    %c0_i32 = arith.constant 0 : i32
    %c0_i32_0 = arith.constant 0 : i32
    return %arg0, %c0_i32 : i32, i32
  }
  func.func @transform_1(%arg0: i32) -> (i32, i32) {
    %c0_i32 = arith.constant 0 : i32
    %c0_i32_0 = arith.constant 0 : i32
    %c0_i32_1 = arith.constant 0 : i32
    return %c0_i32, %c0_i32_0 : i32, i32
  }
  func.func @transform_2(%arg0: i32) -> (i32, i32) {
    %c0_i32 = arith.constant 0 : i32
    %c0_i32_0 = arith.constant 0 : i32
    %c0_i32_1 = arith.constant 0 : i32
    return %c0_i32, %c0_i32_0 : i32, i32
  }
  func.func @transform_3(%arg0: i32) -> (i32, i32) {
    %c0_i32 = arith.constant 0 : i32
    %c0_i32_0 = arith.constant 0 : i32
    %c0_i32_1 = arith.constant 0 : i32
    return %c0_i32, %c0_i32_0 : i32, i32
  }
  func.func @transform_4(%arg0: i32) -> (i32, i32) {
    %c0_i32 = arith.constant 0 : i32
    %c0_i32_0 = arith.constant 0 : i32
    %c0_i32_1 = arith.constant 0 : i32
    return %c0_i32, %c0_i32_0 : i32, i32
  }
  func.func @transform_5(%arg0: i32) -> (i32, i32) {
    %c0_i32 = arith.constant 0 : i32
    %c0_i32_0 = arith.constant 0 : i32
    %c0_i32_1 = arith.constant 0 : i32
    return %c0_i32, %c0_i32_0 : i32, i32
  }
  func.func @transform_6(%arg0: i32) -> (i32, i32, i32) {
    %c0_i32 = arith.constant 0 : i32
    %c0_i32_0 = arith.constant 0 : i32
    %c0_i32_1 = arith.constant 0 : i32
    return %c0_i32, %arg0, %c0_i32_0 : i32, i32, i32
  }
  func.func @transform_7(%arg0: i32) -> (i32, i32) {
    %c0_i32 = arith.constant 0 : i32
    %c0_i32_0 = arith.constant 0 : i32
    %c0_i32_1 = arith.constant 0 : i32
    return %c0_i32, %c0_i32_0 : i32, i32
  }
  func.func @transform_8(%arg0: i32) -> (i32, i32) {
    %c0_i32 = arith.constant 0 : i32
    %c0_i32_0 = arith.constant 0 : i32
    return %arg0, %c0_i32 : i32, i32
  }
}

</mosaic_0001>

<bundles_post_ra>
// kernel: tpu_custom_call.1
= control target key start
LH: loop header
LB: loop body
LE: loop exit
PB: predicated region body
PF: predicated region fallthrough
CT: control target
= control target key end

     0   :  { %13 = vsyncpa [#allocation4], 0  ;;  %s1444_s0 = inlined_call_operand.vmem [shape: f32[16,8], index: 0, kind: input, shape index: {}]   ;;  %s1445_s1 = inlined_call_operand.vmem [shape: f32[16,8], index: 1, kind: input, shape index: {}]   ;;  %s1446_s2 = inlined_call_operand.vmem [shape: f32[8,32], index: 2, kind: input, shape index: {}]   ;;  %s1447_s3 = inlined_call_operand.vmem [shape: f32[8,16], index: 3, kind: input, shape index: {}]   ;;  %s1448_s4 = inlined_call_operand.vmem [shape: f32[2,16], index: 4, kind: input, shape index: {}]   ;;  %s1449_s5 = inlined_call_operand.vmem [shape: f32[16,2], index: 5, kind: input, shape index: {}]   ;;  %s1450_s6 = inlined_call_operand.vmem [shape: f32[2,16,16], index: 6, kind: input, shape index: {}]   ;;  %s1451_s7 = inlined_call_operand.vmem [shape: f32[1,16], index: 7, kind: input, shape index: {}]   ;;  %s1452_s8 = inlined_call_operand.hbm [shape: f32[16,16], index: 8, kind: output, shape index: {}]  }
   0x1   :  { %15 = vsyncpa [#allocation4 + $0x1], 0  ;;  %s1267_s27 = smov 0   ;;  %s1269_s28 = smov 0  }
   0x2   :  { %s1271_s29 = smov 0   ;;  %s1273_s30 = smov 0  }
   0x3 LB: > { %s1288_s9 = sadd.s32 4294967295, %s1210_s30   ;;  %s993_s10 = sadd.s32 4294967294, %s1210_s30   ;;  %s1210_s30 = sphi %s1273_s30, %s1458_s30   ;;  %s1206_s29 = sphi %s1271_s29, %s1457_s29   ;;  %s1202_s28 = sphi %s1269_s28, %s1456_s28   ;;  %s1198_s27 = sphi %s1267_s27, %s1455_s27  }
   0x4   : > { %s1292_s11 = sadd.s32 1, %s1210_s30   ;;  %s159_s12 = sadd.s32 1, %s1206_s29 }
   0x5   : > { %s156_s13 = ssub.s32 %s1210_s30, %s1292_s11  ;;  %p166_p0 = scmp.ne.s32.totalorder %s1206_s29, %s1202_s28 }
   0x6   : > { %p157_p1 = scmp.eq.s32.totalorder %s156_s13, 0  ;;  %p167_p2 = scmp.eq.s32.totalorder %s1210_s30, 0 }
   0x7   : > { %p217_p3 = scmp.eq.s32.totalorder %s1288_s9, 1  ;;  %p222_p4 = scmp.ne.s32.totalorder %s1202_s28, %s1198_s27 }
   0x8   : > { %s1304_s14 = scalar_select %p157_p1, %s1206_s29, %s159_s12  }
   0x9   : > { %p168_p5 = por %p167_p2, %p166_p0  ;;  %p1306_p6 = por %p217_p3, %p166_p0 }
   0xa   : > { %p223_p7 = scmp.eq.s32.totalorder %s993_s10, 1  ;;  %p995_p9 = scmp.ge.s32.totalorder %s1210_s30, 2 }
   0xc   : > { %p1310_p8 = por %p223_p7, %p222_p4  ;;  %257 = sbr.rel (%p995_p9) target bundleno = 26 (0x1a), region = 40 }
  0x13   : > { %267 = sbr.rel (!%p168_p5) target bundleno = 26 (0x1a), region = 48  ;;  %s269_s17 = sand.u32 (%p168_p5), 1, %s1206_s29  }
  0x14   : > { %s997_s18 = sshll.u32 (%p168_p5), %s1210_s30, 3  ;;  %s996_s19 = sshll.u32 (%p168_p5), %s269_s17, 4 }
  0x15   : > { %s273_s22 = scalar_lea.vmem (%p168_p5), %s1450_s6, %s997_s18  ;;  %s271_s23 = scalar_lea.vmem (%p168_p5), [#allocation2], %s996_s19 }
  0x16   : > { %v303_v0 = vld [vmem:[%s273_s22] sm:$0xff] (%p168_p5)  ;;  %v305_v1 = vld [vmem:[%s273_s22 + $0x10] sm:$0xff] (%p168_p5) }
  0x17   : > { %304 = vst [vmem:[%s271_s23] sm:$0xff] (%p168_p5), %v303_v0  ;;  %306 = vst [vmem:[%s271_s23 + $0x8] sm:$0xff] (%p168_p5), %v305_v1 }
  0x1a PF: > { %p998_p10 = scmp.ge.s32.totalorder %s1210_s30, 1  ;;  %p311_p11 = scmp.lt.s32.totalorder %s1210_s30, 3 }
  0x1c   : > { %p312_p12 = pnand %p998_p10, %p311_p11 }
  0x1d   : > { %v360_v2 = vld [vmem:[%s1446_s2] sm:$0xff] (!%p312_p12)  ;;  %p355_p13 = scmp.lt.s32.totalorder (!%p312_p12), %s1288_s9, 1  ;;  %v1212_v4 = vmov (!%p312_p12), 0.0   ;;  %vm1213_vm0 = vmmov (!%p312_p12), 0   ;;  %v446_v6 = vld [vmem:[%s1445_s1 + $0x8] sm:$0xff] (!%p312_p12)  ;;  %vm361_vm1 = vcmask (!%p312_p12), 64512   ;;  %v690_v25 = vlaneseq (!%p312_p12) }
  0x1e   : > { %315 = sbr.rel (%p312_p12) target bundleno = 1269 (0x4f5), region = 86  ;;  %v447_v3 = vld [vmem:[%s1447_s3] sm:$0xff] (!%p312_p12)  ;;  %1034 = vmatprep.subr.mxu0 (!%p312_p12), %v1212_v4  ;;  %1036 = vmatprep.mubr.msk.f32.mxu0 (!%p312_p12), %vm1213_vm0, %v1212_v4  ;;  %v530_v8 = vld [vmem:[%s1449_s5 + $0x8] sm:$0xff] (!%p312_p12)  ;;  %v1214_v9 = vmov (!%p312_p12), 0.0|0.0   ;;  %v1215_v12 = vmov (!%p312_p12), 0   ;;  %vm531_vm2 = vcmask (!%p312_p12), 130048  }
  0x1f   : > { %v445_v5 = vld [vmem:[%s1445_s1] sm:$0xff] (!%p312_p12)  ;;  %1035 = vmatpush3.msra.mxu0 (!%p312_p12), %v360_v2  ;;  %1039 = vmatprep.subr.mxu1 (!%p312_p12), %v447_v3  ;;  %vm1077_vm3 = vmpackc.low (!%p312_p12), %vm531_vm2, %vm531_vm2  ;;  %v1216_v22 = vmov (!%p312_p12), 1   ;;  %v691_v26 = vshrl.u32 (!%p312_p12), %v690_v25, 7  ;;  %s1378_s17 = sand.u32 (!%p312_p12), 1, %s1202_s28   ;;  %s1217_s20 = smov (!%p312_p12), 120  }
  0x20   : > { %v529_v7 = vld [vmem:[%s1449_s5] sm:$0xff] (!%p312_p12)  ;;  %1040 = vmatpush3.msra.mxu1 (!%p312_p12), %v447_v3  ;;  %1041 = vmatprep.mubr.msk.f32.mxu1 (!%p312_p12), %vm361_vm1, %v445_v5  ;;  %s999_s18 = sshll.u32 (!%p312_p12), %s1378_s17, 4  ;;  %s1218_s23 = smov (!%p312_p12), 16  }
  0x21   : > { %1042 = vmatmul.mubr.msk.f32.vlgmr.msra.gmra.mrb[0].mxu1 (!%p312_p12), %vm361_vm1, %v446_v6  ;;  %1072 = vmatprep.subr.bf16.mxu0 (!%p312_p12), %v1214_v9  ;;  %v1073_v10 = vpack.c.bf16 (!%p312_p12), %v530_v8, %v529_v7  ;;  %v605_v19 = vld [vmem:[%s1448_s4] sm:$0x3] (!%p312_p12)  ;;  %v692_v27 = vsub.s32 (!%p312_p12), 0, %v691_v26  ;;  %v791_v29 = vsub.s32 (!%p312_p12), 1, %v691_v26  ;;  %s320_s19 = scalar_lea.vmem (!%p312_p12), [#allocation2], %s999_s18  ;;  %s1220_s25 = smov (!%p312_p12), 112  }
  0x22   : > { %1075 = vmatprep.subr.bf16.mxu1 (!%p312_p12), %v1214_v9  ;;  %1055 = vmatprep.mubr.msk.f32.mxu1 (!%p312_p12), %vm1213_vm0, %v1212_v4  ;;  %v695_v31 = vld [vmem:[%s320_s19] sm:$0xff] (!%p312_p12)  ;;  %v1011_v36 = vld [vmem:[%s320_s19 + $0x8] sm:$0xff] (!%p312_p12)  ;;  %s1000_s26 = sshll.u32 (!%p312_p12), %s1378_s17, 3  ;;  %s1221_s22 = smov (!%p312_p12), [#allocation3]  }
  0x23   : > { %1133 = vset.pattern.permute.xlu0 (!%p312_p12), %v1215_v12  ;;  %v1003_v55 = vld [vmem:[%s1451_s7] ss:$0 sm:$0xff] (!%p312_p12)  ;;  %s354_s12 = scalar_lea.vmem (!%p312_p12), [#allocation3], %s1000_s26 }
  0x24   : > { %s916_s13 = sshll.u32 (!%p312_p12), %s354_s12, 4  ;;  %s1401_s13 = int_to_ptr.vmem [resolvable:$true] %s916_s13 }
  0x25   : > { %s356_s21 = scalar_select %p355_p13, %s1288_s9, 1 }
  0x27   : > { %s1001_s24 = sshll.u32 %s356_s21, 3  ;;  %s903_s21 = scalar_lea.sflag [#allocation4], %s1378_s17 }
  0x28   : > { %s358_s10 = scalar_lea.vmem %s1444_s0, %s1001_s24  ;;  %s1219_s24 = smov 8  }
  0x29   : > { %v359_v11 = vld [vmem:[%s358_s10] sm:$0xff]  ;;  %s1014_s10 = sshll.u32 %s1288_s9, 7  ;;  %s1148_s9 = scalar_lea.vmem %s1401_s13, 128 }
  0x2a   : > { %1037 = vmatmul.mubr.msk.f32.vlgmr.msra.gmra.mrb[0].mxu0 %vm361_vm1, %v359_v11  ;;  %p1149_p0 = scmp.ne.s32.totalorder %s1401_s13, %s1148_s9 }
  0x2b   : > { %1074 = vmatpush3.bf16.msra.mxu0 %v1073_v10  ;;  %1048 = vmatprep.mubr.msk.f32.mxu0 %vm1213_vm0, %v1212_v4 }
  0x2c   : > { %1079 = vmatprep.subr.bf16.mxu0 %v1214_v9  ;;  %p1150_p1 = pnand %p1149_p0, %p1306_p6 }
  0x2e   : > { %p1151_p2 = pneg %p1150_p1 }
  0xf4   : > { %v1357_v13 = vpop.f32.mrb[0].mxu1 }
  0xf5   : > { %v1359_v14 = vpop.f32.mrb[1].mxu1 }
  0xf6   : > { %v1135_v15 = vpack.i.bf16 %v1357_v13, %v1359_v14  ;;  %v1076_v16 = vpack.c.bf16 %v1357_v13, %v1359_v14 }
  0xf8   : > { %1078 = vmatpush3.bf16.xpose.msk.msra.mxu1 %vm1077_vm3, %v1076_v16 }
  0xfd   : > { %v1367_v17 = vpop.f32.mrb[0].mxu0 }
  0xfe   : > { %v1038_v18 = vpop.f32.mrb[1].mxu0  ;;  %1049 = vmatmul.mubr.msk.f32.vlgmr.msra.gmra.mrb[2].mxu0 %vm531_vm2, %v1367_v17 }
  0xff   : > { %1081 = vmatpush3.bf16.msra.mxu0 %v1076_v16  ;;  %1062 = vmatprep.mubr.msk.f32.mxu0 %vm1213_vm0, %v1212_v4 }
 0x100   : > { %1082 = vmatprep.subr.bf16.mxu0 %v1214_v9  ;;  %1056 = vmatmul.mubr.msk.f32.vlgmr.msra.gmra.mrb[2].mxu1 %vm531_vm2, %v605_v19 }
 0x1d1   : > { %v601_v20 = vpop.f32.mrb[2].mxu0 }
 0x1d2   : > { %687 = vperm.xlu0 %1133, %v601_v20   ;;  %v1050_v21 = vpop.f32.mrb[3].mxu0 }
 0x1d3   : > { %v681_v23 = vpop.f32.mrb[2].mxu1 }
 0x1d4   : > { %v1057_v24 = vpop.f32.mrb[3].mxu1  ;;  %v693_v28 = vrot.slane %v681_v23, %v692_v27  ;;  %v792_v34 = vrot.slane %v681_v23, %v791_v29 }
 0x1d6   : > { %1134 = vset.pattern.permute.xlu0 %v1216_v22 }
 0x1d7   : > { %786 = vperm.xlu0 %1134, %v601_v20  }
 0x251   : > { %v688_v30 = vpop.permute.xlu0 %687 }
 0x252   : > { %v694_v32 = vadd.f32 %v693_v28, %v688_v30 }
 0x254   : > { %v696_v33 = vadd.f32 %v695_v31, %v694_v32 }
 0x256   : > { %v787_v35 = vpop.permute.xlu0 %786  ;;  %vm697_vm4 = vcmp.ge.f32.partialorder %v696_v33, 0.0  ;;  %v698_v37 = vmul.f32 0.2, %v696_v33 }
 0x257   : > { %v793_v38 = vadd.f32 %v792_v34, %v787_v35 }
 0x258   : > { %v699_v39 = vsel %vm697_vm4, %v696_v33, %v698_v37 }
 0x259   : > { %v796_v40 = vadd.f32 %v1011_v36, %v793_v38  ;;  %v700_v41 = vsel %vm531_vm2, %v699_v39, -inf }
 0x25a   : > { %701 = vmax.xlane.f32.xlu1 %v700_v41 }
 0x25b   : > { %vm797_vm5 = vcmp.ge.f32.partialorder %v796_v40, 0.0  ;;  %v798_v42 = vmul.f32 0.2, %v796_v40 }
 0x25d   : > { %v799_v43 = vsel %vm797_vm5, %v796_v40, %v798_v42 }
 0x25e   : > { %v800_v44 = vsel %vm531_vm2, %v799_v43, -inf }
 0x25f   : > { %801 = vmax.xlane.f32.xlu1 %v800_v44 }
 0x2e7   : > { %v702_v45 = vpop.xlane.xlu1 %701 }
 0x2e8   : > { %v703_v46 = vsub.f32 %v699_v39, %v702_v45 }
 0x2ea   : > { %v704_v47 = vmul.f32 1.442695, %v703_v46 }
 0x2ec   : > { %1140 = vpow2.f32 %v704_v47  ;;  %v802_v48 = vpop.xlane.xlu1 %801 }
 0x2ed   : > { %v803_v49 = vsub.f32 %v799_v43, %v802_v48 }
 0x2ef   : > { %v804_v50 = vmul.f32 1.442695, %v803_v49 }
 0x2f1   : > { %1142 = vpow2.f32 %v804_v50 }
 0x2f6   : > { %v1141_v51 = vpop.eup %1140 }
 0x2f7   : > { %v706_v52 = vsel %vm531_vm2, %v1141_v51, 0.0 }
 0x2f8   : > { %707 = vadd.xlane.f32.xlu1 %v706_v52 }
 0x2fb   : > { %v1143_v53 = vpop.eup %1142 }
 0x2fc   : > { %v806_v54 = vsel %vm531_vm2, %v1143_v53, 0.0 }
 0x2fd   : > { %807 = vadd.xlane.f32.xlu0 %v806_v54 }
 0x309   : > { %1136 = vrot.lane.b32.xlu1 %v1135_v15, %s1217_s20  ;;  %s1399_s20 = scalar_lea.hbm %s1452_s8, %s1014_s10 }
 0x30d   : > { %441 = vrot.lane.b32.xlu1 %v1003_v55, %s1218_s23  ;;  %s1152_s23 = sshll.u32 %s1221_s22, 4  ;;  %s1153_s23 = int_to_ptr.vmem [resolvable:$false] %s1152_s23 }
 0x30e   : > { %p1155_p3 = scmp.lt.s32.totalorder %s1401_s13, %s1153_s23 }
 0x385   : > { %v708_v56 = vpop.xlane.xlu1 %707 }
 0x386   : > { %v709_v57 = vadd.f32 1e-16, %v708_v56 }
 0x388   : > { %1144 = vrcp.f32 %v709_v57 }
 0x389   : > { %v1137_v60 = vpop.permute.xlu1 %1136 }
 0x38a   : > { %v808_v58 = vpop.xlane.xlu0 %807  ;;  %v1139_v61 = vunpack.i.h.bf16 %v1137_v60  ;;  %v1138_v62 = vunpack.i.l.bf16 %v1137_v60 }
 0x38b   : > { %v809_v59 = vadd.f32 1e-16, %v808_v58 }
 0x38c   : > { %v1083_v1 = vpack.c.bf16 %v1139_v61, %v1138_v62 }
 0x38d   : > { %1146 = vrcp.f32 %v809_v59  ;;  %v442_v7 = vpop.permute.xlu1 %441 }
 0x38e   : > { %v444_v10 = vadd.f32 %v442_v7, %v1367_v17 }
 0x392   : > { %v1145_v63 = vpop.eup %1144 }
 0x393   : > { %v711_v0 = vmul.f32 %v1145_v63, %v1141_v51 }
 0x395   : > { %1063 = vmatmul.mubr.msk.f32.vlgmr.msra.gmra.mrb[4].mxu0 %vm531_vm2, %v711_v0 }
 0x396   : > { %1084 = vmatpush3.bf16.msra.mxu0 %v1083_v1  ;;  %1069 = vmatprep.mubr.msk.f32.mxu0 %vm1213_vm0, %v1212_v4 }
 0x397   : > { %v1147_v2 = vpop.eup %1146 }
 0x398   : > { %v811_v3 = vmul.f32 %v1147_v2, %v1143_v53 }
 0x39a   : > { %1070 = vmatmul.mubr.msk.f32.vlgmr.msra.gmra.mrb[6].mxu0 %vm531_vm2, %v811_v3 }
 0x468   : > { %v781_v5 = vpop.f32.mrb[4].mxu0 }
 0x469   : > { %v1064_v6 = vpop.f32.mrb[5].mxu0 }
 0x46d   : > { %v887_v8 = vpop.f32.mrb[6].mxu0 }
 0x46e   : > { %892 = vrot.lane.b32.xlu1 %v887_v8, %s1219_s24  ;;  %v1071_v9 = vpop.f32.mrb[7].mxu0  ;;  %s1154_s24 = scalar_lea.vmem %s1153_s23, 256 }
 0x46f   : > { %p1156_p4 = scmp.lt.s32.totalorder %s1154_s24, %s1148_s9 }
 0x471   : > { %p1157_p5 = por %p1156_p4, %p1155_p3 }
 0x472   : > { %897 = vrot.lane.b32.xlu1 %v444_v10, %s1220_s25 }
 0x473   : > { %p1158_p7 = pnand %p1157_p5, %p1151_p2 }
 0x4e0   : > { %v893_v4 = vpop.permute.xlu1 %892 }
 0x4e1   : > { %v895_v11 = vsel %vm361_vm1, %v781_v5, %v893_v4 }
 0x4e4   : > { %v898_v12 = vpop.permute.xlu1 %897 }
 0x4e5   : > { %v900_v13 = vadd.f32 %v898_v12, %v895_v11 }
 0x4e7   : > { %901 = vst.msk [vmem:[%s354_s12] sm:$0xff] %vm531_vm2, %v900_v13 }
 0x4e8   : > { %1161 = shalt.err (!%p1158_p7)
}
 0x4e9   : > { %s1162_s17 = scalar_lea.hbm %s1399_s20, 128  ;;  %s1166_s10 = scalar_lea.hbm %s1452_s8, 256 }
 0x4ea   : > { %p1163_p10 = scmp.ne.s32.totalorder %s1399_s20, %s1162_s17  ;;  %p1167_p13 = scmp.lt.u32.totalorder %s1399_s20, %s1452_s8 }
 0x4eb   : > { %p1168_p0 = scmp.lt.u32.totalorder %s1166_s10, %s1162_s17  ;;  %p1170_p2 = scmp.lt.u32.totalorder %s1162_s17, %s1399_s20 }
 0x4ec   : > { %p1164_p11 = pnand %p1163_p10, %p1306_p6 }
 0x4ed   : > { %p1169_p1 = por %p1168_p0, %p1167_p13 }
 0x4ee   : > { %p1165_p12 = pneg %p1164_p11 }
 0x4ef   : > { %p1171_p3 = por %p1170_p2, %p1169_p1 }
 0x4f1   : > { %p1172_p4 = pnand %p1171_p3, %p1165_p12 }
 0x4f3   : > { %1175 = shalt.err (!%p1172_p4)
}
 0x4f4   : > { %1085 = dma.vmem_to_hbm [thread:$0]  (%p1306_p6), %s1401_s13, 128, %s1399_s20, %s903_s21  }
 0x4f5 PF: > { %s928_s19 = sand.u32 1, %s1198_s27   ;;  %p1088_p5 = pnand %p995_p9, %p1310_p8 }
 0x4f6   : > { %s929_s9 = scalar_lea.sflag [#allocation4], %s928_s19 }
 0x4f7   : > { %1193 = dma.done.wait (!%p1088_p5), %s929_s9, 128  }
 0x4f8   : > { %1195 = vsyncadd (!%p1088_p5), %s929_s9, 4294967168  ;;  %p18_p7 = scmp.ge.s32.totalorder %s1292_s11, 4   ;;  %s1455_s27 = smov %s1202_s28 }
 0x4f9   : > { %s1456_s28 = smov %s1206_s29  ;;  %s1457_s29 = smov %s1304_s14 }
 0x4fa   : > { %s1458_s30 = smov %s1292_s11  ;;  %20 = sbr.rel (!%p18_p7) target bundleno = 3 (0x3), region = 134 }
 0x501   :  { %934 = vsyncpa [#allocation4], 1 }
 0x502   :  { %936 = vsyncpa [#allocation4 + $0x1], 1 }

</bundles_post_ra>
